<compile_context>
chip_gen: v5e
topology: v5e:2x2
jax: 0.10.0
libtpu: 0.0.40
codegen_flags: <defaults>
</compile_context>

<pallas_src>
import functools

import jax
import jax.numpy as jnp
from jax.experimental import pallas as pl
from jax.experimental.pallas import tpu as pltpu

LANE = 128        # TPU lane width; all channel axes are padded to this
NEG_SLOPE = 0.01  # F.leaky_relu default negative slope


# ------------------------------ Pallas kernel -------------------------------

def discriminator_kernel(x_ref,
                         w1_ref, b1_ref, w2_ref, b2_ref,
                         w3_ref, b3_ref, w4_ref, b4_ref,
                         fcw_ref, fcb_ref,
                         o_ref):
    """Whole Discriminator forward; every activation stays in VMEM/vregs.

    x_ref  : (B, W, LANE)      channels-last, channel-padded input (H == 1)
    wN_ref : (3, LANE, LANE)   conv taps kw=0,1,2; each tap is (Cin_pad, Cout_pad)
    bN_ref : (1, LANE)
    fcw_ref: (W, LANE)         fc weight permuted to channels-last, zero-padded
    fcb_ref: (1, 1)
    o_ref  : (B, 1)            logits
    """
    x = x_ref[...]
    B, W, C = x.shape

    def conv3_lrelu(h, w_ref, b_ref):
        # 1-D conv (k=3, stride=1, pad=1) along W == three shifted matmuls.
        zero = jnp.zeros((B, 1, C), jnp.float32)
        left = jnp.concatenate([zero, h[:, :-1, :]], axis=1)    # h[w-1]
        right = jnp.concatenate([h[:, 1:, :], zero], axis=1)    # h[w+1]
        y = (jnp.dot(left.reshape(B * W, C), w_ref[0],
                     preferred_element_type=jnp.float32)
             + jnp.dot(h.reshape(B * W, C), w_ref[1],
                       preferred_element_type=jnp.float32)
             + jnp.dot(right.reshape(B * W, C), w_ref[2],
                       preferred_element_type=jnp.float32)
             + b_ref[...])
        y = jnp.where(y > 0.0, y, NEG_SLOPE * y)                # leaky_relu
        return y.reshape(B, W, C)

    h = conv3_lrelu(x, w1_ref, b1_ref)
    h = conv3_lrelu(h, w2_ref, b2_ref)
    h = conv3_lrelu(h, w3_ref, b3_ref)
    h = conv3_lrelu(h, w4_ref, b4_ref)

    # fc: out[b] = sum_{w,c} h[b,w,c] * fcw[w,c] + fcb   (fcw pre-permuted so
    # channels-last flattening matches PyTorch's x.view(-1, image_size*C8)).
    p = h * fcw_ref[...]                                   # (B, W, C)
    s = jnp.sum(p, axis=1)                                 # (B, C)
    o_ref[...] = jnp.sum(s, axis=1, keepdims=True) + fcb_ref[...]


# ------------------------------- forward glue -------------------------------

def discriminator_forward(x, kp):
    """x: (B, Cin, 1, W) NCHW -> logits (B, 1). Single fused pallas_call."""
    B, Cin, H, W = x.shape
    assert H == 1
    # Tiny one-shot conversion to channels-last + lane padding; all per-layer
    # activations stay inside the kernel.
    xcl = jnp.transpose(x[:, :, 0, :], (0, 2, 1))                 # (B, W, Cin)
    xcl = jnp.pad(xcl, ((0, 0), (0, 0), (0, LANE - Cin)))

    flops = 4 * 3 * 2 * (B * W) * LANE * LANE + 3 * B * W * LANE
    bytes_accessed = 4 * (int(xcl.size)
                          + sum(int(v.size) for v in jax.tree_util.tree_leaves(kp))
                          + B)

    out = pl.pallas_call(
        discriminator_kernel,
        out_shape=jax.ShapeDtypeStruct((B, 1), jnp.float32),
        in_specs=[pl.BlockSpec(memory_space=pltpu.MemorySpace.VMEM)] * 11,
        out_specs=pl.BlockSpec(memory_space=pltpu.MemorySpace.VMEM),
        cost_estimate=pl.CostEstimate(flops=flops, transcendentals=0,
                                      bytes_accessed=bytes_accessed),
    )(xcl,
      kp["w1"], kp["b1"], kp["w2"], kp["b2"],
      kp["w3"], kp["b3"], kp["w4"], kp["b4"],
      kp["fcw"], kp["fcb"])
    return out


# ------------------------------- parameters ---------------------------------

def init_torch_params(key, image_size, channel_sizeIn, channel_sizeOut):
    """Parameters in PyTorch layouts (Conv2d: (Co,Ci,3,3), Linear: (out,in))."""
    C1 = channel_sizeOut
    C2, C4, C8 = 2 * C1, 4 * C1, 8 * C1
    ks = jax.random.split(key, 10)

    def nrm(k, shape, scale=0.1):
        return scale * jax.random.normal(k, shape, dtype=jnp.float32)

    return {
        "c1_w": nrm(ks[0], (C1, channel_sizeIn, 3, 3)), "c1_b": nrm(ks[1], (C1,)),
        "c2_w": nrm(ks[2], (C2, C1, 3, 3)),             "c2_b": nrm(ks[3], (C2,)),
        "c3_w": nrm(ks[4], (C4, C2, 3, 3)),             "c3_b": nrm(ks[5], (C4,)),
        "c4_w": nrm(ks[6], (C8, C4, 3, 3)),             "c4_b": nrm(ks[7], (C8,)),
        "fc_w": nrm(ks[8], (1, image_size * C8)),       "fc_b": nrm(ks[9], (1,)),
    }


def prepare_kernel_params(p, image_size, channel_sizeOut):
    """One-time (outside jit) repack of PyTorch params into lane-dense layouts."""
    W = image_size
    C8 = channel_sizeOut * 8

    def conv_taps(w):                       # (Co, Ci, 3, 3) -> (3, LANE, LANE)
        Co, Ci = w.shape[0], w.shape[1]
        taps = jnp.zeros((3, LANE, LANE), jnp.float32)
        for kw in range(3):                 # only kh == 1 contributes (H == 1)
            taps = taps.at[kw, :Ci, :Co].set(w[:, :, 1, kw].T)
        return taps

    def pad_bias(b):
        return jnp.zeros((1, LANE), jnp.float32).at[0, :b.shape[0]].set(b)

    # PyTorch x.view(-1, C8*W) flattens channel-major: idx = c*W + w.
    fc_wc = p["fc_w"].reshape(C8, W).T      # (W, C8) channels-last order
    fcw = jnp.zeros((W, LANE), jnp.float32).at[:, :C8].set(fc_wc)
    fcb = p["fc_b"].reshape(1, 1).astype(jnp.float32)

    return {
        "w1": conv_taps(p["c1_w"]), "b1": pad_bias(p["c1_b"]),
        "w2": conv_taps(p["c2_w"]), "b2": pad_bias(p["c2_b"]),
        "w3": conv_taps(p["c3_w"]), "b3": pad_bias(p["c3_b"]),
        "w4": conv_taps(p["c4_w"]), "b4": pad_bias(p["c4_b"]),
        "fcw": fcw, "fcb": fcb,
    }


# ----------------------------- pure-JAX reference ---------------------------

def reference_forward(x, p):
    def conv_lrelu(h, w, b):
        y = jax.lax.conv_general_dilated(
            h, w, window_strides=(1, 1), padding=((1, 1), (1, 1)),
            dimension_numbers=("NCHW", "OIHW", "NCHW"))
        y = y + b[None, :, None, None]
        return jnp.where(y > 0.0, y, NEG_SLOPE * y)

    h = conv_lrelu(x, p["c1_w"], p["c1_b"])
    h = conv_lrelu(h, p["c2_w"], p["c2_b"])
    h = conv_lrelu(h, p["c3_w"], p["c3_b"])
    h = conv_lrelu(h, p["c4_w"], p["c4_b"])
    flat = h.reshape(h.shape[0], -1)        # (B, C8*1*W), channel-major
    return flat @ p["fc_w"].T + p["fc_b"][None, :]


# ---------------------------------- main -------------------------------------

if __name__ == "__main__":
    B = 2
    image_size = 16
    channel_sizeIn = 3
    channel_sizeOut = 4

    key = jax.random.PRNGKey(0)
    p_key, x_key = jax.random.split(key)
    torch_params = init_torch_params(p_key, image_size, channel_sizeIn, channel_sizeOut)
    kparams = prepare_kernel_params(torch_params, image_size, channel_sizeOut)

    # WGAN-GP pipeline feeds (B, channel_sizeIn, 1, image_size) images (H == 1),
    # as required by fc = Linear(image_size * channel_sizeOut * 8, 1).
    x = jax.random.normal(x_key, (B, channel_sizeIn, 1, image_size), dtype=jnp.float32)

    fwd = jax.jit(discriminator_forward)
    out = jax.block_until_ready(fwd(x, kparams))

    assert out.shape == (B, 1), out.shape
    assert out.dtype == jnp.float32
    assert bool(jnp.all(jnp.isfinite(out)))

    ref = jax.block_until_ready(jax.jit(reference_forward)(x, torch_params))
    assert jnp.allclose(out, ref, atol=1e-4, rtol=1e-4), (out, ref)

    print("KERNEL_OK")
</pallas_src>

<mosaic_0001>
module attributes {stable_mosaic.version = 11 : i64} {
  func.func @discriminator_kernel(%arg0: memref<2x16x128xf32, #tpu.memory_space<vmem>>, %arg1: memref<3x128x128xf32, #tpu.memory_space<vmem>>, %arg2: memref<1x128xf32, #tpu.memory_space<vmem>>, %arg3: memref<3x128x128xf32, #tpu.memory_space<vmem>>, %arg4: memref<1x128xf32, #tpu.memory_space<vmem>>, %arg5: memref<3x128x128xf32, #tpu.memory_space<vmem>>, %arg6: memref<1x128xf32, #tpu.memory_space<vmem>>, %arg7: memref<3x128x128xf32, #tpu.memory_space<vmem>>, %arg8: memref<1x128xf32, #tpu.memory_space<vmem>>, %arg9: memref<16x128xf32, #tpu.memory_space<vmem>>, %arg10: memref<1x1xf32, #tpu.memory_space<vmem>>, %arg11: memref<2x1xf32, #tpu.memory_space<vmem>>) attributes {dimension_semantics = [], scalar_prefetch = 0 : i64, scratch_operands = 0 : i64, tpu.core_type = #tpu.core_type<tc>} {
    %c0 = arith.constant 0 : index
    %c0_0 = arith.constant 0 : index
    %c0_1 = arith.constant 0 : index
    %0 = vector.load %arg0[%c0, %c0_0, %c0_1] : memref<2x16x128xf32, #tpu.memory_space<vmem>>, vector<2x16x128xf32>
    %cst = arith.constant 0.000000e+00 : f32
    %1 = vector.broadcast %cst : f32 to vector<2x1x128xf32>
    %2 = vector.extract_strided_slice %0 {offsets = [0, 0, 0], sizes = [2, 15, 128], strides = [1, 1, 1]} : vector<2x16x128xf32> to vector<2x15x128xf32>
    %3 = tpu.concatenate %1, %2 in 1 : vector<2x1x128xf32>, vector<2x15x128xf32> -> vector<2x16x128xf32>
    %4 = vector.extract_strided_slice %0 {offsets = [0, 1, 0], sizes = [2, 15, 128], strides = [1, 1, 1]} : vector<2x16x128xf32> to vector<2x15x128xf32>
    %5 = tpu.concatenate %4, %1 in 1 : vector<2x15x128xf32>, vector<2x1x128xf32> -> vector<2x16x128xf32>
    %6 = vector.shape_cast %3 : vector<2x16x128xf32> to vector<32x128xf32>
    %c0_2 = arith.constant 0 : index
    %c0_3 = arith.constant 0 : index
    %c0_4 = arith.constant 0 : index
    %7 = vector.load %arg1[%c0_2, %c0_3, %c0_4] : memref<3x128x128xf32, #tpu.memory_space<vmem>>, vector<1x128x128xf32>
    %8 = vector.shape_cast %7 : vector<1x128x128xf32> to vector<128x128xf32>
    %cst_5 = arith.constant dense<0.000000e+00> : vector<32x128xf32>
    %9 = tpu.matmul %6, %8, %cst_5 {dimension_numbers = #tpu.dot_dimension_numbers<[1], [0], [0], [1], [0, 0, 1, 1], [], []>} : vector<32x128xf32>, vector<128x128xf32>, vector<32x128xf32> -> vector<32x128xf32>
    %10 = vector.shape_cast %0 : vector<2x16x128xf32> to vector<32x128xf32>
    %c1 = arith.constant 1 : index
    %c0_6 = arith.constant 0 : index
    %c0_7 = arith.constant 0 : index
    %11 = vector.load %arg1[%c1, %c0_6, %c0_7] : memref<3x128x128xf32, #tpu.memory_space<vmem>>, vector<1x128x128xf32>
    %12 = vector.shape_cast %11 : vector<1x128x128xf32> to vector<128x128xf32>
    %cst_8 = arith.constant dense<0.000000e+00> : vector<32x128xf32>
    %13 = tpu.matmul %10, %12, %cst_8 {dimension_numbers = #tpu.dot_dimension_numbers<[1], [0], [0], [1], [0, 0, 1, 1], [], []>} : vector<32x128xf32>, vector<128x128xf32>, vector<32x128xf32> -> vector<32x128xf32>
    %14 = arith.addf %9, %13 : vector<32x128xf32>
    %15 = vector.shape_cast %5 : vector<2x16x128xf32> to vector<32x128xf32>
    %c2 = arith.constant 2 : index
    %c0_9 = arith.constant 0 : index
    %c0_10 = arith.constant 0 : index
    %16 = vector.load %arg1[%c2, %c0_9, %c0_10] : memref<3x128x128xf32, #tpu.memory_space<vmem>>, vector<1x128x128xf32>
    %17 = vector.shape_cast %16 : vector<1x128x128xf32> to vector<128x128xf32>
    %cst_11 = arith.constant dense<0.000000e+00> : vector<32x128xf32>
    %18 = tpu.matmul %15, %17, %cst_11 {dimension_numbers = #tpu.dot_dimension_numbers<[1], [0], [0], [1], [0, 0, 1, 1], [], []>} : vector<32x128xf32>, vector<128x128xf32>, vector<32x128xf32> -> vector<32x128xf32>
    %19 = arith.addf %14, %18 : vector<32x128xf32>
    %c0_12 = arith.constant 0 : index
    %c0_13 = arith.constant 0 : index
    %20 = vector.load %arg2[%c0_12, %c0_13] : memref<1x128xf32, #tpu.memory_space<vmem>>, vector<1x128xf32>
    %21 = vector.broadcast %20 : vector<1x128xf32> to vector<32x128xf32>
    %22 = arith.addf %19, %21 : vector<32x128xf32>
    %cst_14 = arith.constant 0.000000e+00 : f32
    %23 = vector.broadcast %cst_14 : f32 to vector<32x128xf32>
    %24 = arith.cmpf ogt, %22, %23 : vector<32x128xf32>
    %cst_15 = arith.constant 0.00999999977 : f32
    %25 = vector.broadcast %cst_15 : f32 to vector<32x128xf32>
    %26 = arith.mulf %25, %22 : vector<32x128xf32>
    %27 = arith.select %24, %22, %26 : vector<32x128xi1>, vector<32x128xf32>
    %28 = vector.shape_cast %27 : vector<32x128xf32> to vector<2x16x128xf32>
    %cst_16 = arith.constant 0.000000e+00 : f32
    %29 = vector.broadcast %cst_16 : f32 to vector<2x1x128xf32>
    %30 = vector.extract_strided_slice %28 {offsets = [0, 0, 0], sizes = [2, 15, 128], strides = [1, 1, 1]} : vector<2x16x128xf32> to vector<2x15x128xf32>
    %31 = tpu.concatenate %29, %30 in 1 : vector<2x1x128xf32>, vector<2x15x128xf32> -> vector<2x16x128xf32>
    %32 = vector.extract_strided_slice %28 {offsets = [0, 1, 0], sizes = [2, 15, 128], strides = [1, 1, 1]} : vector<2x16x128xf32> to vector<2x15x128xf32>
    %33 = tpu.concatenate %32, %29 in 1 : vector<2x15x128xf32>, vector<2x1x128xf32> -> vector<2x16x128xf32>
    %34 = vector.shape_cast %31 : vector<2x16x128xf32> to vector<32x128xf32>
    %c0_17 = arith.constant 0 : index
    %c0_18 = arith.constant 0 : index
    %c0_19 = arith.constant 0 : index
    %35 = vector.load %arg3[%c0_17, %c0_18, %c0_19] : memref<3x128x128xf32, #tpu.memory_space<vmem>>, vector<1x128x128xf32>
    %36 = vector.shape_cast %35 : vector<1x128x128xf32> to vector<128x128xf32>
    %cst_20 = arith.constant dense<0.000000e+00> : vector<32x128xf32>
    %37 = tpu.matmul %34, %36, %cst_20 {dimension_numbers = #tpu.dot_dimension_numbers<[1], [0], [0], [1], [0, 0, 1, 1], [], []>} : vector<32x128xf32>, vector<128x128xf32>, vector<32x128xf32> -> vector<32x128xf32>
    %38 = vector.shape_cast %28 : vector<2x16x128xf32> to vector<32x128xf32>
    %c1_21 = arith.constant 1 : index
    %c0_22 = arith.constant 0 : index
    %c0_23 = arith.constant 0 : index
    %39 = vector.load %arg3[%c1_21, %c0_22, %c0_23] : memref<3x128x128xf32, #tpu.memory_space<vmem>>, vector<1x128x128xf32>
    %40 = vector.shape_cast %39 : vector<1x128x128xf32> to vector<128x128xf32>
    %cst_24 = arith.constant dense<0.000000e+00> : vector<32x128xf32>
    %41 = tpu.matmul %38, %40, %cst_24 {dimension_numbers = #tpu.dot_dimension_numbers<[1], [0], [0], [1], [0, 0, 1, 1], [], []>} : vector<32x128xf32>, vector<128x128xf32>, vector<32x128xf32> -> vector<32x128xf32>
    %42 = arith.addf %37, %41 : vector<32x128xf32>
    %43 = vector.shape_cast %33 : vector<2x16x128xf32> to vector<32x128xf32>
    %c2_25 = arith.constant 2 : index
    %c0_26 = arith.constant 0 : index
    %c0_27 = arith.constant 0 : index
    %44 = vector.load %arg3[%c2_25, %c0_26, %c0_27] : memref<3x128x128xf32, #tpu.memory_space<vmem>>, vector<1x128x128xf32>
    %45 = vector.shape_cast %44 : vector<1x128x128xf32> to vector<128x128xf32>
    %cst_28 = arith.constant dense<0.000000e+00> : vector<32x128xf32>
    %46 = tpu.matmul %43, %45, %cst_28 {dimension_numbers = #tpu.dot_dimension_numbers<[1], [0], [0], [1], [0, 0, 1, 1], [], []>} : vector<32x128xf32>, vector<128x128xf32>, vector<32x128xf32> -> vector<32x128xf32>
    %47 = arith.addf %42, %46 : vector<32x128xf32>
    %c0_29 = arith.constant 0 : index
    %c0_30 = arith.constant 0 : index
    %48 = vector.load %arg4[%c0_29, %c0_30] : memref<1x128xf32, #tpu.memory_space<vmem>>, vector<1x128xf32>
    %49 = vector.broadcast %48 : vector<1x128xf32> to vector<32x128xf32>
    %50 = arith.addf %47, %49 : vector<32x128xf32>
    %cst_31 = arith.constant 0.000000e+00 : f32
    %51 = vector.broadcast %cst_31 : f32 to vector<32x128xf32>
    %52 = arith.cmpf ogt, %50, %51 : vector<32x128xf32>
    %cst_32 = arith.constant 0.00999999977 : f32
    %53 = vector.broadcast %cst_32 : f32 to vector<32x128xf32>
    %54 = arith.mulf %53, %50 : vector<32x128xf32>
    %55 = arith.select %52, %50, %54 : vector<32x128xi1>, vector<32x128xf32>
    %56 = vector.shape_cast %55 : vector<32x128xf32> to vector<2x16x128xf32>
    %cst_33 = arith.constant 0.000000e+00 : f32
    %57 = vector.broadcast %cst_33 : f32 to vector<2x1x128xf32>
    %58 = vector.extract_strided_slice %56 {offsets = [0, 0, 0], sizes = [2, 15, 128], strides = [1, 1, 1]} : vector<2x16x128xf32> to vector<2x15x128xf32>
    %59 = tpu.concatenate %57, %58 in 1 : vector<2x1x128xf32>, vector<2x15x128xf32> -> vector<2x16x128xf32>
    %60 = vector.extract_strided_slice %56 {offsets = [0, 1, 0], sizes = [2, 15, 128], strides = [1, 1, 1]} : vector<2x16x128xf32> to vector<2x15x128xf32>
    %61 = tpu.concatenate %60, %57 in 1 : vector<2x15x128xf32>, vector<2x1x128xf32> -> vector<2x16x128xf32>
    %62 = vector.shape_cast %59 : vector<2x16x128xf32> to vector<32x128xf32>
    %c0_34 = arith.constant 0 : index
    %c0_35 = arith.constant 0 : index
    %c0_36 = arith.constant 0 : index
    %63 = vector.load %arg5[%c0_34, %c0_35, %c0_36] : memref<3x128x128xf32, #tpu.memory_space<vmem>>, vector<1x128x128xf32>
    %64 = vector.shape_cast %63 : vector<1x128x128xf32> to vector<128x128xf32>
    %cst_37 = arith.constant dense<0.000000e+00> : vector<32x128xf32>
    %65 = tpu.matmul %62, %64, %cst_37 {dimension_numbers = #tpu.dot_dimension_numbers<[1], [0], [0], [1], [0, 0, 1, 1], [], []>} : vector<32x128xf32>, vector<128x128xf32>, vector<32x128xf32> -> vector<32x128xf32>
    %66 = vector.shape_cast %56 : vector<2x16x128xf32> to vector<32x128xf32>
    %c1_38 = arith.constant 1 : index
    %c0_39 = arith.constant 0 : index
    %c0_40 = arith.constant 0 : index
    %67 = vector.load %arg5[%c1_38, %c0_39, %c0_40] : memref<3x128x128xf32, #tpu.memory_space<vmem>>, vector<1x128x128xf32>
    %68 = vector.shape_cast %67 : vector<1x128x128xf32> to vector<128x128xf32>
    %cst_41 = arith.constant dense<0.000000e+00> : vector<32x128xf32>
    %69 = tpu.matmul %66, %68, %cst_41 {dimension_numbers = #tpu.dot_dimension_numbers<[1], [0], [0], [1], [0, 0, 1, 1], [], []>} : vector<32x128xf32>, vector<128x128xf32>, vector<32x128xf32> -> vector<32x128xf32>
    %70 = arith.addf %65, %69 : vector<32x128xf32>
    %71 = vector.shape_cast %61 : vector<2x16x128xf32> to vector<32x128xf32>
    %c2_42 = arith.constant 2 : index
    %c0_43 = arith.constant 0 : index
    %c0_44 = arith.constant 0 : index
    %72 = vector.load %arg5[%c2_42, %c0_43, %c0_44] : memref<3x128x128xf32, #tpu.memory_space<vmem>>, vector<1x128x128xf32>
    %73 = vector.shape_cast %72 : vector<1x128x128xf32> to vector<128x128xf32>
    %cst_45 = arith.constant dense<0.000000e+00> : vector<32x128xf32>
    %74 = tpu.matmul %71, %73, %cst_45 {dimension_numbers = #tpu.dot_dimension_numbers<[1], [0], [0], [1], [0, 0, 1, 1], [], []>} : vector<32x128xf32>, vector<128x128xf32>, vector<32x128xf32> -> vector<32x128xf32>
    %75 = arith.addf %70, %74 : vector<32x128xf32>
    %c0_46 = arith.constant 0 : index
    %c0_47 = arith.constant 0 : index
    %76 = vector.load %arg6[%c0_46, %c0_47] : memref<1x128xf32, #tpu.memory_space<vmem>>, vector<1x128xf32>
    %77 = vector.broadcast %76 : vector<1x128xf32> to vector<32x128xf32>
    %78 = arith.addf %75, %77 : vector<32x128xf32>
    %cst_48 = arith.constant 0.000000e+00 : f32
    %79 = vector.broadcast %cst_48 : f32 to vector<32x128xf32>
    %80 = arith.cmpf ogt, %78, %79 : vector<32x128xf32>
    %cst_49 = arith.constant 0.00999999977 : f32
    %81 = vector.broadcast %cst_49 : f32 to vector<32x128xf32>
    %82 = arith.mulf %81, %78 : vector<32x128xf32>
    %83 = arith.select %80, %78, %82 : vector<32x128xi1>, vector<32x128xf32>
    %84 = vector.shape_cast %83 : vector<32x128xf32> to vector<2x16x128xf32>
    %cst_50 = arith.constant 0.000000e+00 : f32
    %85 = vector.broadcast %cst_50 : f32 to vector<2x1x128xf32>
    %86 = vector.extract_strided_slice %84 {offsets = [0, 0, 0], sizes = [2, 15, 128], strides = [1, 1, 1]} : vector<2x16x128xf32> to vector<2x15x128xf32>
    %87 = tpu.concatenate %85, %86 in 1 : vector<2x1x128xf32>, vector<2x15x128xf32> -> vector<2x16x128xf32>
    %88 = vector.extract_strided_slice %84 {offsets = [0, 1, 0], sizes = [2, 15, 128], strides = [1, 1, 1]} : vector<2x16x128xf32> to vector<2x15x128xf32>
    %89 = tpu.concatenate %88, %85 in 1 : vector<2x15x128xf32>, vector<2x1x128xf32> -> vector<2x16x128xf32>
    %90 = vector.shape_cast %87 : vector<2x16x128xf32> to vector<32x128xf32>
    %c0_51 = arith.constant 0 : index
    %c0_52 = arith.constant 0 : index
    %c0_53 = arith.constant 0 : index
    %91 = vector.load %arg7[%c0_51, %c0_52, %c0_53] : memref<3x128x128xf32, #tpu.memory_space<vmem>>, vector<1x128x128xf32>
    %92 = vector.shape_cast %91 : vector<1x128x128xf32> to vector<128x128xf32>
    %cst_54 = arith.constant dense<0.000000e+00> : vector<32x128xf32>
    %93 = tpu.matmul %90, %92, %cst_54 {dimension_numbers = #tpu.dot_dimension_numbers<[1], [0], [0], [1], [0, 0, 1, 1], [], []>} : vector<32x128xf32>, vector<128x128xf32>, vector<32x128xf32> -> vector<32x128xf32>
    %94 = vector.shape_cast %84 : vector<2x16x128xf32> to vector<32x128xf32>
    %c1_55 = arith.constant 1 : index
    %c0_56 = arith.constant 0 : index
    %c0_57 = arith.constant 0 : index
    %95 = vector.load %arg7[%c1_55, %c0_56, %c0_57] : memref<3x128x128xf32, #tpu.memory_space<vmem>>, vector<1x128x128xf32>
    %96 = vector.shape_cast %95 : vector<1x128x128xf32> to vector<128x128xf32>
    %cst_58 = arith.constant dense<0.000000e+00> : vector<32x128xf32>
    %97 = tpu.matmul %94, %96, %cst_58 {dimension_numbers = #tpu.dot_dimension_numbers<[1], [0], [0], [1], [0, 0, 1, 1], [], []>} : vector<32x128xf32>, vector<128x128xf32>, vector<32x128xf32> -> vector<32x128xf32>
    %98 = arith.addf %93, %97 : vector<32x128xf32>
    %99 = vector.shape_cast %89 : vector<2x16x128xf32> to vector<32x128xf32>
    %c2_59 = arith.constant 2 : index
    %c0_60 = arith.constant 0 : index
    %c0_61 = arith.constant 0 : index
    %100 = vector.load %arg7[%c2_59, %c0_60, %c0_61] : memref<3x128x128xf32, #tpu.memory_space<vmem>>, vector<1x128x128xf32>
    %101 = vector.shape_cast %100 : vector<1x128x128xf32> to vector<128x128xf32>
    %cst_62 = arith.constant dense<0.000000e+00> : vector<32x128xf32>
    %102 = tpu.matmul %99, %101, %cst_62 {dimension_numbers = #tpu.dot_dimension_numbers<[1], [0], [0], [1], [0, 0, 1, 1], [], []>} : vector<32x128xf32>, vector<128x128xf32>, vector<32x128xf32> -> vector<32x128xf32>
    %103 = arith.addf %98, %102 : vector<32x128xf32>
    %c0_63 = arith.constant 0 : index
    %c0_64 = arith.constant 0 : index
    %104 = vector.load %arg8[%c0_63, %c0_64] : memref<1x128xf32, #tpu.memory_space<vmem>>, vector<1x128xf32>
    %105 = vector.broadcast %104 : vector<1x128xf32> to vector<32x128xf32>
    %106 = arith.addf %103, %105 : vector<32x128xf32>
    %cst_65 = arith.constant 0.000000e+00 : f32
    %107 = vector.broadcast %cst_65 : f32 to vector<32x128xf32>
    %108 = arith.cmpf ogt, %106, %107 : vector<32x128xf32>
    %cst_66 = arith.constant 0.00999999977 : f32
    %109 = vector.broadcast %cst_66 : f32 to vector<32x128xf32>
    %110 = arith.mulf %109, %106 : vector<32x128xf32>
    %111 = arith.select %108, %106, %110 : vector<32x128xi1>, vector<32x128xf32>
    %112 = vector.shape_cast %111 : vector<32x128xf32> to vector<2x16x128xf32>
    %c0_67 = arith.constant 0 : index
    %c0_68 = arith.constant 0 : index
    %113 = vector.load %arg9[%c0_67, %c0_68] : memref<16x128xf32, #tpu.memory_space<vmem>>, vector<16x128xf32>
    %114 = vector.shape_cast %113 : vector<16x128xf32> to vector<1x16x128xf32>
    %115 = vector.broadcast %114 : vector<1x16x128xf32> to vector<2x16x128xf32>
    %116 = arith.mulf %112, %115 : vector<2x16x128xf32>
    %cst_69 = arith.constant dense<0.000000e+00> : vector<2x128xf32>
    %117 = vector.multi_reduction <add>, %116, %cst_69 [1] : vector<2x16x128xf32> to vector<2x128xf32>
    %cst_70 = arith.constant dense<0.000000e+00> : vector<2xf32>
    %118 = vector.multi_reduction <add>, %117, %cst_70 [1] : vector<2x128xf32> to vector<2xf32>
    %119 = vector.shape_cast %118 : vector<2xf32> to vector<2x1xf32>
    %c0_71 = arith.constant 0 : index
    %c0_72 = arith.constant 0 : index
    %120 = vector.load %arg10[%c0_71, %c0_72] : memref<1x1xf32, #tpu.memory_space<vmem>>, vector<1x1xf32>
    %121 = vector.broadcast %120 : vector<1x1xf32> to vector<2x1xf32>
    %122 = arith.addf %119, %121 : vector<2x1xf32>
    %c0_73 = arith.constant 0 : index
    %c0_74 = arith.constant 0 : index
    %123 = vector.load %arg11[%c0_73, %c0_74] : memref<2x1xf32, #tpu.memory_space<vmem>>, vector<2x1xf32>
    tpu.vector_store %arg11[%c0_73, %c0_74], %122 {strides = array<i32>} : memref<2x1xf32, #tpu.memory_space<vmem>>, vector<2x1xf32>,
    return
  }
}

</mosaic_0001>

<bundles_post_ra>
// kernel: discriminator_forward.1
= control target key start
LH: loop header
LB: loop body
LE: loop exit
PB: predicated region body
PF: predicated region fallthrough
CT: control target
= control target key end

     0   :  { %s1221_s0 = inlined_call_operand.vmem [shape: f32[2,16,128], index: 0, kind: input, shape index: {}]   ;;  %s1222_s1 = inlined_call_operand.hbm [shape: f32[3,128,128], index: 1, kind: input, shape index: {}]   ;;  %s1223_s2 = inlined_call_operand.vmem [shape: f32[1,128], index: 2, kind: input, shape index: {}]   ;;  %s1224_s3 = inlined_call_operand.hbm [shape: f32[3,128,128], index: 3, kind: input, shape index: {}]   ;;  %s1225_s4 = inlined_call_operand.vmem [shape: f32[1,128], index: 4, kind: input, shape index: {}]   ;;  %s1226_s5 = inlined_call_operand.hbm [shape: f32[3,128,128], index: 5, kind: input, shape index: {}]   ;;  %s1227_s6 = inlined_call_operand.vmem [shape: f32[1,128], index: 6, kind: input, shape index: {}]   ;;  %s1228_s7 = inlined_call_operand.hbm [shape: f32[3,128,128], index: 7, kind: input, shape index: {}]   ;;  %s1229_s8 = inlined_call_operand.vmem [shape: f32[1,128], index: 8, kind: input, shape index: {}]   ;;  %s1230_s9 = inlined_call_operand.vmem [shape: f32[16,128], index: 9, kind: input, shape index: {}]   ;;  %s1231_s10 = inlined_call_operand.<no memory space> [shape: f32[1,1], index: 10, kind: input, shape index: {}]   ;;  %s1232_s11 = inlined_call_operand.vmem [shape: f32[2,1], index: 11, kind: output, shape index: {}]  }
   0x1   :  { %v16_v0 = vstv %s1231_s10 }
   0x2   :  { %17 = vst [vmem:[#allocation2] sm:$0x1] %v16_v0 }
   0x3   :  { %18 = vsyncpa [#allocation4], 0 }
   0x4   :  { %19 = vsyncpa [#allocation6], 0 }
   0x5   :  { %20 = vsyncpa [#allocation9], 0  ;;  %s42_s21 = sshll.u32 %s1224_s3, 4  ;;  %s1045_s22 = smov [#allocation5]   ;;  %s43_s21 = int_to_ptr.hbm [resolvable:$true] %s42_s21 }
   0x6   :  { %s44_s23 = sshll.u32 %s1045_s22, 4  ;;  %s27_s26 = sshll.u32 %s1222_s1, 4  ;;  %s45_s23 = int_to_ptr.vmem [resolvable:$true] %s44_s23  ;;  %s28_s26 = int_to_ptr.hbm [resolvable:$true] %s27_s26 }
   0x7   :  { %s1046_s27 = smov 128   ;;  %s1047_s28 = smov 8  }
   0x8   :  { %50 = dma.hbm_to_vmem [thread:$0]  %s43_s21, 6144, %s45_s23, [#allocation6], %s1046_s27, %s1046_s27, %s1047_s28  }
   0x9   :  { %s1048_s10 = smov [#allocation3]   ;;  %s57_s13 = sshll.u32 %s1226_s5, 4  ;;  %s58_s13 = int_to_ptr.hbm [resolvable:$true] %s57_s13 }
   0xa   :  { %s29_s29 = sshll.u32 %s1048_s10, 4  ;;  %s72_s15 = sshll.u32 %s1228_s7, 4  ;;  %s30_s29 = int_to_ptr.vmem [resolvable:$true] %s29_s29  ;;  %s73_s15 = int_to_ptr.hbm [resolvable:$true] %s72_s15 }
   0xb   :  { %35 = dma.hbm_to_vmem [thread:$0]  %s28_s26, 6144, %s30_s29, [#allocation4], %s1046_s27, %s1046_s27, %s1047_s28  }
   0xc   :  { %s1049_s16 = smov [#allocation7]   ;;  %s1050_s1 = smov [#allocation8]  }
   0xd   :  { %s59_s17 = sshll.u32 %s1049_s16, 4  ;;  %s74_s18 = sshll.u32 %s1050_s1, 4  ;;  %s60_s17 = int_to_ptr.vmem [resolvable:$true] %s59_s17  ;;  %s75_s18 = int_to_ptr.vmem [resolvable:$true] %s74_s18 }
   0xe   :  { %65 = dma.hbm_to_vmem [thread:$0]  %s58_s13, 6144, %s60_s17, [#allocation6], %s1046_s27, %s1046_s27, %s1047_s28  }
   0xf   :  { %80 = dma.hbm_to_vmem [thread:$0]  %s73_s15, 6144, %s75_s18, [#allocation9], %s1046_s27, %s1046_s27, %s1047_s28  }
  0x10   :  { %1039 = dma.done.wait [#allocation4], 6144  }
  0x11   :  { %1040 = vsyncadd [#allocation4], 4294961152 }
  0x12   :  { %1041 = dma.done.wait [#allocation6], 12288  }
  0x13   :  { %1042 = vsyncadd [#allocation6], 4294955008 }
  0x14   :  { %1043 = dma.done.wait [#allocation9], 6144  }
  0x15   :  { %1044 = vsyncadd [#allocation9], 4294961152  ;;  %v244_v1 = vld [vmem:[#allocation3 + $0x178] sm:$0xff]  ;;  %v243_v2 = vld [vmem:[#allocation3 + $0x170] sm:$0xff]  ;;  %vm124_vm0 = vcmask 1046528   ;;  %vm111_vm1 = vcmask 1040384  }
  0x16   :  { %v169_v3 = vld [vmem:[#allocation3 + $0xf8] sm:$0xff]  ;;  %245 = vmatpush.msra.mxu2 %v244_v1  ;;  %v168_v5 = vld [vmem:[#allocation3 + $0xf0] sm:$0xff]  ;;  %v242_v6 = vld [vmem:[#allocation3 + $0x168] sm:$0xff] }
  0x17   :  { %170 = vmatpush.msra.mxu0 %v169_v3  ;;  %v152_v4 = vld [vmem:[#allocation3 + $0x78] sm:$0xff]  ;;  %v151_v7 = vld [vmem:[#allocation3 + $0x70] sm:$0xff]  ;;  %v167_v8 = vld [vmem:[#allocation3 + $0xe8] sm:$0xff] }
  0x18   :  { %199 = vmatpush.msra.mxu1 %v152_v4  ;;  %246 = vmatpush.msra.mxu2 %v243_v2  ;;  %v150_v9 = vld [vmem:[#allocation3 + $0x68] sm:$0xff]  ;;  %v241_v10 = vld [vmem:[#allocation3 + $0x160] sm:$0xff]  ;;  %v240_v13 = vld [vmem:[#allocation3 + $0x158] sm:$0xff] }
  0x19   :  { %171 = vmatpush.msra.mxu0 %v168_v5  ;;  %v166_v11 = vld [vmem:[#allocation3 + $0xe0] sm:$0xff]  ;;  %v165_v14 = vld [vmem:[#allocation3 + $0xd8] sm:$0xff]  ;;  %v239_v16 = vld [vmem:[#allocation3 + $0x150] sm:$0xff] }
  0x1a   :  { %200 = vmatpush.msra.mxu1 %v151_v7  ;;  %247 = vmatpush.msra.mxu2 %v242_v6  ;;  %v149_v12 = vld [vmem:[#allocation3 + $0x60] sm:$0xff]  ;;  %v148_v15 = vld [vmem:[#allocation3 + $0x58] sm:$0xff]  ;;  %v164_v17 = vld [vmem:[#allocation3 + $0xd0] sm:$0xff] }
  0x1b   :  { %172 = vmatpush.msra.mxu0 %v167_v8  ;;  %v147_v18 = vld [vmem:[#allocation3 + $0x50] sm:$0xff]  ;;  %v238_v19 = vld [vmem:[#allocation3 + $0x148] sm:$0xff]  ;;  %v237_v22 = vld [vmem:[#allocation3 + $0x140] sm:$0xff] }
  0x1c   :  { %201 = vmatpush.msra.mxu1 %v150_v9  ;;  %248 = vmatpush.msra.mxu2 %v241_v10  ;;  %v163_v20 = vld [vmem:[#allocation3 + $0xc8] sm:$0xff]  ;;  %v162_v23 = vld [vmem:[#allocation3 + $0xc0] sm:$0xff]  ;;  %v236_v25 = vld [vmem:[#allocation3 + $0x138] sm:$0xff] }
  0x1d   :  { %173 = vmatpush.msra.mxu0 %v166_v11  ;;  %v146_v21 = vld [vmem:[#allocation3 + $0x48] sm:$0xff]  ;;  %v145_v24 = vld [vmem:[#allocation3 + $0x40] sm:$0xff]  ;;  %v161_v26 = vld [vmem:[#allocation3 + $0xb8] sm:$0xff] }
  0x1e   :  { %202 = vmatpush.msra.mxu1 %v149_v12  ;;  %249 = vmatpush.msra.mxu2 %v240_v13  ;;  %v144_v27 = vld [vmem:[#allocation3 + $0x38] sm:$0xff]  ;;  %v235_v28 = vld [vmem:[#allocation3 + $0x130] sm:$0xff]  ;;  %v234_v30 = vld [vmem:[#allocation3 + $0x128] sm:$0xff] }
  0x1f   :  { %174 = vmatpush.msra.mxu0 %v165_v14  ;;  %v160_v29 = vld [vmem:[#allocation3 + $0xb0] sm:$0xff]  ;;  %v159_v32 = vld [vmem:[#allocation3 + $0xa8] sm:$0xff]  ;;  %v233_v34 = vld [vmem:[#allocation3 + $0x120] sm:$0xff] }
  0x20   :  { %203 = vmatpush.msra.mxu1 %v148_v15  ;;  %250 = vmatpush.msra.mxu2 %v239_v16  ;;  %v143_v31 = vld [vmem:[#allocation3 + $0x30] sm:$0xff]  ;;  %v142_v33 = vld [vmem:[#allocation3 + $0x28] sm:$0xff]  ;;  %v158_v35 = vld [vmem:[#allocation3 + $0xa0] sm:$0xff] }
  0x21   :  { %175 = vmatpush.msra.mxu0 %v164_v17  ;;  %v232_v36 = vld [vmem:[#allocation3 + $0x118] sm:$0xff]  ;;  %v141_v37 = vld [vmem:[#allocation3 + $0x20] sm:$0xff]  ;;  %v231_v42 = vld [vmem:[#allocation3 + $0x110] sm:$0xff] }
  0x22   :  { %204 = vmatpush.msra.mxu1 %v147_v18  ;;  %251 = vmatpush.msra.mxu2 %v238_v19  ;;  %v157_v38 = vld [vmem:[#allocation3 + $0x98] sm:$0xff]  ;;  %v1132_v40 = vld [vmem:[%s1221_s0 + $0x8] sm:$0xff]  ;;  %v156_v43 = vld [vmem:[#allocation3 + $0x90] sm:$0xff] }
  0x23   :  { %176 = vmatpush.msra.mxu0 %v163_v20  ;;  %v103_v39 = vld [vmem:[%s1221_s0] sm:$0xff]  ;;  %v139_v44 = vld [vmem:[#allocation3 + $0x10] sm:$0xff]  ;;  %v126_v46 = vrot.slane %v1132_v40, 1  ;;  %v230_v49 = vld [vmem:[#allocation3 + $0x108] sm:$0xff]  ;;  %v113_v0 = vrot.slane %v1132_v40, 7 }
  0x24   :  { %205 = vmatpush.msra.mxu1 %v146_v21  ;;  %252 = vmatpush.msra.mxu2 %v237_v22  ;;  %v140_v41 = vld [vmem:[#allocation3 + $0x18] sm:$0xff]  ;;  %v125_v45 = vrot.slane %v103_v39, 1  ;;  %v357_v48 = vld [vmem:[#allocation5 + $0xf0] sm:$0xff]  ;;  %v155_v50 = vld [vmem:[#allocation3 + $0x88] sm:$0xff]  ;;  %v112_v57 = vrot.slane %v103_v39, 7 }
  0x25   :  { %177 = vmatpush.msra.mxu0 %v162_v23  ;;  %v358_v47 = vld [vmem:[#allocation5 + $0xf8] sm:$0xff]  ;;  %v138_v51 = vld [vmem:[#allocation3 + $0x8] sm:$0xff]  ;;  %v229_v53 = vld [vmem:[#allocation3 + $0x100] sm:$0xff] }
  0x26   :  { %206 = vmatpush.msra.mxu1 %v145_v24  ;;  %253 = vmatpush.msra.mxu2 %v236_v25  ;;  %v356_v52 = vld [vmem:[#allocation5 + $0xe8] sm:$0xff]  ;;  %v154_v54 = vld [vmem:[#allocation3 + $0x80] sm:$0xff]  ;;  %v127_v55 = vsel %vm124_vm0, %v125_v45, %v126_v46  ;;  %vm1137_vm2 = vmneg %vm111_vm1  ;;  %v114_v6 = vsel %vm111_vm1, %v112_v57, %v113_v0 }
  0x27   :  { %178 = vmatpush.msra.mxu0 %v161_v26  ;;  %359 = vmatpush.msra.mxu3 %v358_v47  ;;  %v137_v56 = vld [vmem:[#allocation3] sm:$0xff]  ;;  %v341_v59 = vld [vmem:[#allocation5 + $0x78] sm:$0xff]  ;;  %v340_v62 = vld [vmem:[#allocation5 + $0x70] sm:$0xff] }
  0x28   :  { %207 = vmatpush.msra.mxu1 %v144_v27  ;;  %254 = vmatpush.msra.mxu2 %v235_v28  ;;  %v355_v60 = vld [vmem:[#allocation5 + $0xe0] sm:$0xff]  ;;  %v433_v61 = vld [vmem:[#allocation5 + $0x178] sm:$0xff]  ;;  %v432_v1 = vld [vmem:[#allocation5 + $0x170] sm:$0xff] }
  0x29   :  { %179 = vmatpush.msra.mxu0 %v160_v29  ;;  %360 = vmatpush.msra.mxu3 %v357_v48  ;;  %v354_v63 = vld [vmem:[#allocation5 + $0xd8] sm:$0xff]  ;;  %v339_v2 = vld [vmem:[#allocation5 + $0x68] sm:$0xff]  ;;  %v353_v3 = vld [vmem:[#allocation5 + $0xd0] sm:$0xff] }
  0x2a   :  { %208 = vmatpush.msra.mxu1 %v143_v31  ;;  %255 = vmatpush.msra.mxu2 %v234_v30  ;;  %v431_v4 = vld [vmem:[#allocation5 + $0x168] sm:$0xff]  ;;  %v338_v5 = vld [vmem:[#allocation5 + $0x60] sm:$0xff]  ;;  %v106_v8 = vld [vmem:[%s1221_s0 + $0x18] sm:$0xff] }
  0x2b   :  { %180 = vmatpush.msra.mxu0 %v159_v32  ;;  %361 = vmatpush.msra.mxu3 %v356_v52  ;;  %v105_v7 = vld [vmem:[%s1221_s0 + $0x10] sm:$0xff]  ;;  %v337_v9 = vld [vmem:[#allocation5 + $0x58] sm:$0xff]  ;;  %v430_v11 = vld [vmem:[#allocation5 + $0x160] sm:$0xff]  ;;  %v129_v13 = vrot.slane %v106_v8, 1  ;;  %v116_v27 = vrot.slane %v106_v8, 7 }
  0x2c   :  { %209 = vmatpush.msra.mxu1 %v142_v33  ;;  %256 = vmatpush.msra.mxu2 %v233_v34  ;;  %v352_v10 = vld [vmem:[#allocation5 + $0xc8] sm:$0xff]  ;;  %v128_v12 = vrot.slane %v105_v7, 1  ;;  %v336_v14 = vld [vmem:[#allocation5 + $0x50] sm:$0xff]  ;;  %v351_v15 = vld [vmem:[#allocation5 + $0xc0] sm:$0xff]  ;;  %v115_v21 = vrot.slane %v105_v7, 7 }
  0x2d   :  { %181 = vmatpush.msra.mxu0 %v158_v35  ;;  %362 = vmatpush.msra.mxu3 %v355_v60  ;;  %v429_v16 = vld [vmem:[#allocation5 + $0x158] sm:$0xff]  ;;  %v335_v17 = vld [vmem:[#allocation5 + $0x48] sm:$0xff]  ;;  %v428_v19 = vld [vmem:[#allocation5 + $0x150] sm:$0xff] }
  0x2e   :  { %210 = vmatpush.msra.mxu1 %v141_v37  ;;  %257 = vmatpush.msra.mxu2 %v232_v36  ;;  %v350_v18 = vld [vmem:[#allocation5 + $0xb8] sm:$0xff]  ;;  %v130_v20 = vsel %vm124_vm0, %v128_v12, %v129_v13  ;;  %v334_v22 = vld [vmem:[#allocation5 + $0x40] sm:$0xff]  ;;  %v349_v23 = vld [vmem:[#allocation5 + $0xb0] sm:$0xff]  ;;  %v117_v28 = vsel %vm111_vm1, %v115_v21, %v116_v27 }
  0x2f   :  { %182 = vmatpush.msra.mxu0 %v157_v38  ;;  %363 = vmatpush.msra.mxu3 %v354_v63  ;;  %v333_v24 = vld [vmem:[#allocation5 + $0x38] sm:$0xff]  ;;  %v348_v25 = vld [vmem:[#allocation5 + $0xa8] sm:$0xff]  ;;  %v332_v26 = vld [vmem:[#allocation5 + $0x30] sm:$0xff] }
  0x30   :  { %211 = vmatpush.msra.mxu1 %v140_v41  ;;  %258 = vmatpush.msra.mxu2 %v231_v42  ;;  %v347_v29 = vld [vmem:[#allocation5 + $0xa0] sm:$0xff]  ;;  %v331_v30 = vld [vmem:[#allocation5 + $0x28] sm:$0xff]  ;;  %v346_v32 = vld [vmem:[#allocation5 + $0x98] sm:$0xff] }
  0x31   :  { %183 = vmatpush.msra.mxu0 %v156_v43  ;;  %364 = vmatpush.msra.mxu3 %v353_v3  ;;  %v427_v31 = vld [vmem:[#allocation5 + $0x148] sm:$0xff]  ;;  %v330_v33 = vld [vmem:[#allocation5 + $0x20] sm:$0xff]  ;;  %v345_v35 = vld [vmem:[#allocation5 + $0x90] sm:$0xff] }
  0x32   :  { %212 = vmatpush.msra.mxu1 %v139_v44  ;;  %259 = vmatpush.msra.mxu2 %v230_v49  ;;  %v426_v34 = vld [vmem:[#allocation5 + $0x140] sm:$0xff]  ;;  %v329_v36 = vld [vmem:[#allocation5 + $0x18] sm:$0xff]  ;;  %v344_v38 = vld [vmem:[#allocation5 + $0x88] sm:$0xff] }
  0x33   :  { %184 = vmatpush.msra.mxu0 %v155_v50  ;;  %365 = vmatpush.msra.mxu3 %v352_v10  ;;  %v425_v37 = vld [vmem:[#allocation5 + $0x138] sm:$0xff]  ;;  %v343_v41 = vld [vmem:[#allocation5 + $0x80] sm:$0xff]  ;;  %v327_v42 = vld [vmem:[#allocation5 + $0x8] sm:$0xff] }
  0x34   :  { %213 = vmatpush.msra.mxu1 %v138_v51  ;;  %260 = vmatpush.msra.mxu2 %v229_v53  ;;  %v423_v43 = vld [vmem:[#allocation5 + $0x128] sm:$0xff]  ;;  %v326_v44 = vld [vmem:[#allocation5] sm:$0xff]  ;;  %v420_v47 = vld [vmem:[#allocation5 + $0x110] sm:$0xff] }
  0x35   :  { %185 = vmatpush.msra.mxu0 %v154_v54  ;;  %261 = vmatmul.f32.vlgmr.msra.gmra.mxu2 %v127_v55  ;;  %v422_v45 = vld [vmem:[#allocation5 + $0x120] sm:$0xff]  ;;  %v419_v48 = vld [vmem:[#allocation5 + $0x108] sm:$0xff]  ;;  %v1161_v53 = vld [vmem:[%s1223_s2] ss:$0 sm:$0xff] }
  0x36   :  { %214 = vmatpush.msra.mxu1 %v137_v56  ;;  %186 = vmatmul.f32.vlgmr.msra.gmra.mxu0 %v103_v39  ;;  %v328_v39 = vld [vmem:[#allocation5 + $0x10] sm:$0xff]  ;;  %v418_v49 = vld [vmem:[#allocation5 + $0x100] sm:$0xff]  ;;  %v528_v12 = vld [vmem:[#allocation7 + $0x68] sm:$0xff] }
  0x37   :  { %909 = vmatmul.msk.f32.vlgmr.msra.gmra.mxu1 %vm1137_vm2, %v112_v57  ;;  %388 = vmatpush.msrb.mxu0 %v341_v59 }
  0x38   :  { %434 = vmatpush.msrb.mxu1 %v433_v61  ;;  %366 = vmatpush.msra.mxu3 %v351_v15  ;;  %v544_v15 = vld [vmem:[#allocation7 + $0xe0] sm:$0xff] }
  0x39   :  { %389 = vmatpush.msrb.mxu0 %v340_v62 }
  0x3a   :  { %435 = vmatpush.msrb.mxu1 %v432_v1  ;;  %367 = vmatpush.msra.mxu3 %v350_v18 }
  0x3b   :  { %390 = vmatpush.msrb.mxu0 %v339_v2 }
  0x3c   :  { %436 = vmatpush.msrb.mxu1 %v431_v4  ;;  %368 = vmatpush.msra.mxu3 %v349_v23  ;;  %v527_v23 = vld [vmem:[#allocation7 + $0x60] sm:$0xff] }
  0x3d   :  { %912 = vmatmul.msk.f32.gmra.mxu2 %vm124_vm0, %v126_v46  ;;  %391 = vmatpush.msrb.mxu0 %v338_v5  ;;  %v421_v46 = vld [vmem:[#allocation5 + $0x118] sm:$0xff] }
  0x3e   :  { %189 = vmatmul.f32.gmra.mxu0 %v1132_v40  ;;  %437 = vmatpush.msrb.mxu1 %v430_v11  ;;  %v424_v40 = vld [vmem:[#allocation5 + $0x130] sm:$0xff]  ;;  %v547_v5 = vld [vmem:[#allocation7 + $0xf8] sm:$0xff]  ;;  %v545_v11 = vld [vmem:[#allocation7 + $0xe8] sm:$0xff] }
  0x3f   :  { %218 = vmatmul.f32.gmra.mxu1 %v114_v6  ;;  %392 = vmatpush.msrb.mxu0 %v337_v9  ;;  %v546_v6 = vld [vmem:[#allocation7 + $0xf0] sm:$0xff] }
  0x40   :  { %438 = vmatpush.msrb.mxu1 %v429_v16  ;;  %369 = vmatpush.msra.mxu3 %v348_v25  ;;  %v621_v16 = vld [vmem:[#allocation7 + $0x170] sm:$0xff] }
  0x41   :  { %393 = vmatpush.msrb.mxu0 %v336_v14  ;;  %548 = vmatpush.msrb.mxu2 %v547_v5  ;;  %v533_v5 = vld [vmem:[#allocation7 + $0x88] sm:$0xff] }
  0x42   :  { %439 = vmatpush.msrb.mxu1 %v428_v19  ;;  %370 = vmatpush.msra.mxu3 %v347_v29  ;;  %v542_v29 = vld [vmem:[#allocation7 + $0xd0] sm:$0xff] }
  0x43   :  { %394 = vmatpush.msrb.mxu0 %v335_v17  ;;  %549 = vmatpush.msrb.mxu2 %v546_v6  ;;  %v517_v6 = vld [vmem:[#allocation7 + $0x10] sm:$0xff] }
  0x44   :  { %440 = vmatpush.msrb.mxu1 %v427_v31  ;;  %371 = vmatpush.msra.mxu3 %v346_v32 }
  0x45   :  { %267 = vmatmul.f32.gmra.mxu2 %v130_v20  ;;  %395 = vmatpush.msrb.mxu0 %v334_v22  ;;  %v543_v22 = vld [vmem:[#allocation7 + $0xd8] sm:$0xff] }
  0x46   :  { %192 = vmatmul.f32.gmra.mxu0 %v105_v7  ;;  %441 = vmatpush.msrb.mxu1 %v426_v34  ;;  %v530_v7 = vld [vmem:[#allocation7 + $0x78] sm:$0xff]  ;;  %v525_v34 = vld [vmem:[#allocation7 + $0x50] sm:$0xff] }
  0x47   :  { %911 = vmatmul.msk.f32.gmra.mxu1 %vm1137_vm2, %v115_v21  ;;  %396 = vmatpush.msrb.mxu0 %v333_v24 }
  0x48   :  { %372 = vmatpush.msra.mxu3 %v345_v35  ;;  %442 = vmatpush.msrb.mxu1 %v425_v37 }
  0x49   :  { %397 = vmatpush.msrb.mxu0 %v332_v26  ;;  %550 = vmatpush.msrb.mxu2 %v545_v11  ;;  %v515_v11 = vld [vmem:[#allocation7] sm:$0xff] }
  0x4a   :  { %373 = vmatpush.msra.mxu3 %v344_v38  ;;  %443 = vmatpush.msrb.mxu1 %v424_v40 }
  0x4b   :  { %398 = vmatpush.msrb.mxu0 %v331_v30  ;;  %551 = vmatpush.msrb.mxu2 %v544_v15  ;;  %v526_v30 = vld [vmem:[#allocation7 + $0x58] sm:$0xff]  ;;  %v608_v15 = vld [vmem:[#allocation7 + $0x108] sm:$0xff] }
  0x4c   :  { %374 = vmatpush.msra.mxu3 %v343_v41  ;;  %444 = vmatpush.msrb.mxu1 %v423_v43 }
  0x4d   :  { %913 = vmatmul.msk.f32.gmra.mxu2 %vm124_vm0, %v129_v13  ;;  %399 = vmatpush.msrb.mxu0 %v330_v33  ;;  %v622_v13 = vld [vmem:[#allocation7 + $0x178] sm:$0xff]  ;;  %v541_v33 = vld [vmem:[#allocation7 + $0xc8] sm:$0xff] }
  0x4e   :  { %195 = vmatmul.f32.gmra.mxu0 %v106_v8  ;;  %445 = vmatpush.msrb.mxu1 %v422_v45  ;;  %v529_v8 = vld [vmem:[#allocation7 + $0x70] sm:$0xff] }
  0x4f   :  { %224 = vmatmul.f32.gmra.mxu1 %v117_v28  ;;  %400 = vmatpush.msrb.mxu0 %v329_v36 }
  0x50   :  { %446 = vmatpush.msrb.mxu1 %v421_v46  ;;  %577 = vmatpush.msrb.mxu3 %v530_v7  ;;  %v613_v7 = vld [vmem:[#allocation7 + $0x130] sm:$0xff] }
  0x51   :  { %401 = vmatpush.msrb.mxu0 %v328_v39  ;;  %552 = vmatpush.msrb.mxu2 %v543_v22 }
  0x52   :  { %447 = vmatpush.msrb.mxu1 %v420_v47  ;;  %578 = vmatpush.msrb.mxu3 %v529_v8  ;;  %v540_v47 = vld [vmem:[#allocation7 + $0xc0] sm:$0xff] }
  0x53   :  { %402 = vmatpush.msrb.mxu0 %v327_v42  ;;  %553 = vmatpush.msrb.mxu2 %v542_v29  ;;  %v532_v8 = vld [vmem:[#allocation7 + $0x80] sm:$0xff] }
  0x54   :  { %448 = vmatpush.msrb.mxu1 %v419_v48  ;;  %579 = vmatpush.msrb.mxu3 %v528_v12  ;;  %v524_v48 = vld [vmem:[#allocation7 + $0x48] sm:$0xff]  ;;  %v611_v12 = vld [vmem:[#allocation7 + $0x120] sm:$0xff] }
  0x55   :  { %403 = vmatpush.msrb.mxu0 %v326_v44  ;;  %554 = vmatpush.msrb.mxu2 %v541_v33 }
  0x56   :  { %449 = vmatpush.msrb.mxu1 %v418_v49  ;;  %580 = vmatpush.msrb.mxu3 %v527_v23  ;;  %v620_v49 = vld [vmem:[#allocation7 + $0x168] sm:$0xff] }
  0x57   :  { %623 = vmatpush.msra.mxu0 %v622_v13  ;;  %555 = vmatpush.msrb.mxu2 %v540_v47  ;;  %v610_v13 = vld [vmem:[#allocation7 + $0x118] sm:$0xff] }
  0x58   :  { %581 = vmatpush.msrb.mxu3 %v526_v30 }
  0x59   :  { %624 = vmatpush.msra.mxu0 %v621_v16  ;;  %v607_v16 = vld [vmem:[#allocation7 + $0x100] sm:$0xff] }
  0x5a   :  { %582 = vmatpush.msrb.mxu3 %v525_v34  ;;  %v736_v34 = vld [vmem:[#allocation8 + $0xf8] sm:$0xff] }
  0x5b   :  { %625 = vmatpush.msra.mxu0 %v620_v49  ;;  %737 = vmatpush.msra.mxu1 %v736_v34  ;;  %v803_v34 = vld [vmem:[#allocation8 + $0x138] sm:$0xff] }
  0x5c   :  { %583 = vmatpush.msrb.mxu3 %v524_v48 }
  0xb3   :  { %v187_v50 = vpop.f32.mrf.mxu0 }
  0xb4   :  { %v216_v51 = vpop.f32.mrf.mxu1 }
  0xb5   :  { %v217_v52 = vadd.f32 %v216_v51, %v187_v50  ;;  %v539_v50 = vld [vmem:[#allocation7 + $0xb8] sm:$0xff]  ;;  %v523_v51 = vld [vmem:[#allocation7 + $0x40] sm:$0xff] }
  0xb6   :  { %556 = vmatpush.msrb.mxu2 %v539_v50  ;;  %584 = vmatpush.msrb.mxu3 %v523_v51 }
  0xb8   :  { %v262_v54 = vpop.f32.mrf.mxu2 }
  0xb9   :  { %v274_v55 = vadd.f32 %v262_v54, %v217_v52  ;;  %v619_v52 = vld [vmem:[#allocation7 + $0x160] sm:$0xff]  ;;  %v522_v54 = vld [vmem:[#allocation7 + $0x38] sm:$0xff] }
  0xba   :  { %626 = vmatpush.msra.mxu0 %v619_v52  ;;  %585 = vmatpush.msrb.mxu3 %v522_v54  ;;  %v732_v52 = vld [vmem:[#allocation8 + $0xd8] sm:$0xff] }
  0xbb   :  { %v282_v56 = vadd.f32 %v1161_v53, %v274_v55  ;;  %v190_v57 = vpop.f32.mrf.mxu0  ;;  %v618_v55 = vld [vmem:[#allocation7 + $0x158] sm:$0xff] }
  0xbc   :  { %v219_v59 = vpop.f32.mrf.mxu1  ;;  %627 = vmatpush.msra.mxu0 %v618_v55 }
  0xbd   :  { %v220_v60 = vadd.f32 %v219_v59, %v190_v57  ;;  %vm286_vm3 = vcmp.gt.f32.partialorder %v282_v56, 0.0  ;;  %v290_v61 = vmul.f32 0.01, %v282_v56  ;;  %v521_v57 = vld [vmem:[#allocation7 + $0x30] sm:$0xff] }
  0xbe   :  { %v617_v59 = vld [vmem:[#allocation7 + $0x150] sm:$0xff]  ;;  %586 = vmatpush.msrb.mxu3 %v521_v57 }
  0xbf   :  { %v294_v62 = vsel %vm286_vm3, %v282_v56, %v290_v61  ;;  %v537_v56 = vld [vmem:[#allocation7 + $0xa8] sm:$0xff]  ;;  %628 = vmatpush.msra.mxu0 %v617_v59  ;;  %v731_v59 = vld [vmem:[#allocation8 + $0xd0] sm:$0xff]  ;;  %vm887_vm3 = vcmask 1041409  }
  0xc0   :  { %v265_v63 = vpop.f32.mrf.mxu2  ;;  %v302_v0 = vrot.slane %v294_v62, 7  ;;  %375 = vmatmul.f32.vlgmr.msra.gmra.mxu3 %v294_v62  ;;  %v314_v17 = vrot.slane %v294_v62, 1  ;;  %v520_v61 = vld [vmem:[#allocation7 + $0x28] sm:$0xff] }
  0xc1   :  { %v275_v1 = vadd.f32 %v265_v63, %v220_v60  ;;  %v536_v60 = vld [vmem:[#allocation7 + $0xa0] sm:$0xff]  ;;  %v616_v62 = vld [vmem:[#allocation7 + $0x148] sm:$0xff]  ;;  %587 = vmatpush.msrb.mxu3 %v520_v61  ;;  %v535_v63 = vld [vmem:[#allocation7 + $0x98] sm:$0xff] }
  0xc2   :  { %915 = vmatmul.msk.f32.vlgmr.msrb.gmra.mxu0 %vm1137_vm2, %v302_v0 }
  0xc3   :  { %v283_v2 = vadd.f32 %v1161_v53, %v275_v1  ;;  %v193_v3 = vpop.f32.mrf.mxu0  ;;  %629 = vmatpush.msra.mxu0 %v616_v62  ;;  %v615_v1 = vld [vmem:[#allocation7 + $0x140] sm:$0xff] }
  0xc4   :  { %v222_v4 = vpop.f32.mrf.mxu1  ;;  %v808_v62 = vld [vmem:[#allocation8 + $0x160] sm:$0xff] }
  0xc5   :  { %v223_v9 = vadd.f32 %v222_v4, %v193_v3  ;;  %vm287_vm4 = vcmp.gt.f32.partialorder %v283_v2, 0.0  ;;  %v291_v10 = vmul.f32 0.01, %v283_v2  ;;  %630 = vmatpush.msra.mxu0 %v615_v1  ;;  %v518_v3 = vld [vmem:[#allocation7 + $0x18] sm:$0xff] }
  0xc6   :  { %v614_v4 = vld [vmem:[#allocation7 + $0x138] sm:$0xff] }
  0xc7   :  { %v295_v14 = vsel %vm287_vm4, %v283_v2, %v291_v10  ;;  %v534_v2 = vld [vmem:[#allocation7 + $0x90] sm:$0xff]  ;;  %631 = vmatpush.msra.mxu0 %v614_v4  ;;  %v612_v10 = vld [vmem:[#allocation7 + $0x128] sm:$0xff]  ;;  %vm890_vm4 = vcmask 1041408  }
  0xc8   :  { %v268_v18 = vpop.f32.mrf.mxu2  ;;  %v303_v19 = vrot.slane %v295_v14, 7  ;;  %v315_v20 = vrot.slane %v295_v14, 1  ;;  %378 = vmatmul.f32.gmra.mxu3 %v295_v14  ;;  %v609_v14 = vld [vmem:[#allocation7 + $0x110] sm:$0xff] }
  0xc9   :  { %v276_v21 = vadd.f32 %v268_v18, %v223_v9  ;;  %v516_v9 = vld [vmem:[#allocation7 + $0x8] sm:$0xff]  ;;  %632 = vmatpush.msra.mxu0 %v613_v7 }
  0xca   :  { %v304_v24 = vsel %vm111_vm1, %v302_v0, %v303_v19  ;;  %v316_v25 = vsel %vm124_vm0, %v314_v17, %v315_v20  ;;  %v519_v0 = vld [vmem:[#allocation7 + $0x20] sm:$0xff] }
  0xcb   :  { %v284_v26 = vadd.f32 %v1161_v53, %v276_v21  ;;  %407 = vmatmul.f32.gmra.mxu0 %v304_v24  ;;  %450 = vmatmul.f32.vlgmr.msrb.gmra.mxu1 %v316_v25  ;;  %v196_v27 = vpop.f32.mrf.mxu0 }
  0xcc   :  { %v225_v28 = vpop.f32.mrf.mxu1  ;;  %588 = vmatpush.msrb.mxu3 %v519_v0  ;;  %633 = vmatpush.msra.mxu0 %v612_v10  ;;  %v730_v0 = vld [vmem:[#allocation8 + $0xc8] sm:$0xff]  ;;  %v728_v10 = vld [vmem:[#allocation8 + $0xb8] sm:$0xff] }
  0xcd   :  { %v226_v31 = vadd.f32 %v225_v28, %v196_v27  ;;  %vm288_vm5 = vcmp.gt.f32.partialorder %v284_v26, 0.0  ;;  %v292_v32 = vmul.f32 0.01, %v284_v26 }
  0xce   :  { %589 = vmatpush.msrb.mxu3 %v518_v3  ;;  %634 = vmatpush.msra.mxu0 %v611_v12  ;;  %v712_v12 = vld [vmem:[#allocation8 + $0x40] sm:$0xff] }
  0xcf   :  { %v296_v35 = vsel %vm288_vm5, %v284_v26, %v292_v32  ;;  %vm899_vm5 = vcmask 1024  }
  0xd0   :  { %v271_v36 = vpop.f32.mrf.mxu2  ;;  %381 = vmatmul.f32.gmra.mxu3 %v296_v35  ;;  %v305_v37 = vrot.slane %v296_v35, 7  ;;  %v317_v42 = vrot.slane %v296_v35, 1  ;;  %635 = vmatpush.msra.mxu0 %v610_v13  ;;  %v735_v35 = vld [vmem:[#allocation8 + $0xf0] sm:$0xff] }
  0xd1   :  { %v277_v38 = vadd.f32 %v271_v36, %v226_v31  ;;  %590 = vmatpush.msrb.mxu3 %v517_v6  ;;  %v719_v36 = vld [vmem:[#allocation8 + $0x78] sm:$0xff]  ;;  %738 = vmatpush.msra.mxu1 %v735_v35  ;;  %v722_v35 = vld [vmem:[#allocation8 + $0x88] sm:$0xff] }
  0xd2   :  { %636 = vmatpush.msra.mxu0 %v609_v14 }
  0xd3   :  { %v285_v39 = vadd.f32 %v1161_v53, %v277_v38  ;;  %917 = vmatmul.msk.f32.gmra.mxu0 %vm1137_vm2, %v305_v37  ;;  %918 = vmatmul.msk.f32.gmra.mxu1 %vm124_vm0, %v315_v20  ;;  %v538_v53 = vld [vmem:[#allocation7 + $0xb0] sm:$0xff]  ;;  %v1180_v20 = vld [vmem:[%s1225_s4] ss:$0 sm:$0xff] }
  0xd4   :  { %557 = vmatpush.msrb.mxu2 %v538_v53  ;;  %591 = vmatpush.msrb.mxu3 %v516_v9  ;;  %v718_v38 = vld [vmem:[#allocation8 + $0x70] sm:$0xff]  ;;  %v716_v53 = vld [vmem:[#allocation8 + $0x60] sm:$0xff]  ;;  %v713_v9 = vld [vmem:[#allocation8 + $0x48] sm:$0xff] }
  0xd5   :  { %vm289_vm6 = vcmp.gt.f32.partialorder %v285_v39, 0.0  ;;  %v293_v40 = vmul.f32 0.01, %v285_v39  ;;  %637 = vmatpush.msra.mxu0 %v608_v15 }
  0xd6   :  { %558 = vmatpush.msrb.mxu2 %v537_v56  ;;  %592 = vmatpush.msrb.mxu3 %v515_v11  ;;  %v809_v56 = vld [vmem:[#allocation8 + $0x168] sm:$0xff] }
  0xd7   :  { %v297_v41 = vsel %vm289_vm6, %v285_v39, %v293_v40  ;;  %638 = vmatpush.msra.mxu0 %v607_v16  ;;  %v734_v40 = vld [vmem:[#allocation8 + $0xe8] sm:$0xff] }
  0xd8   :  { %v306_v43 = vrot.slane %v297_v41, 7  ;;  %v318_v44 = vrot.slane %v297_v41, 1  ;;  %384 = vmatmul.f32.gmra.mxu3 %v297_v41  ;;  %559 = vmatpush.msrb.mxu2 %v536_v60  ;;  %v717_v41 = vld [vmem:[#allocation8 + $0x68] sm:$0xff]  ;;  %v715_v60 = vld [vmem:[#allocation8 + $0x58] sm:$0xff] }
  0xd9   :  { %739 = vmatpush.msra.mxu1 %v734_v40  ;;  %v801_v40 = vld [vmem:[#allocation8 + $0x128] sm:$0xff] }
  0xda   :  { %v307_v45 = vsel %vm111_vm1, %v305_v37, %v306_v43  ;;  %v319_v46 = vsel %vm124_vm0, %v317_v42, %v318_v44  ;;  %560 = vmatpush.msrb.mxu2 %v535_v63  ;;  %v811_v42 = vld [vmem:[#allocation8 + $0x178] sm:$0xff] }
  0xdb   :  { %413 = vmatmul.f32.gmra.mxu0 %v307_v45  ;;  %456 = vmatmul.f32.gmra.mxu1 %v319_v46  ;;  %v733_v45 = vld [vmem:[#allocation8 + $0xe0] sm:$0xff]  ;;  %v810_v46 = vld [vmem:[#allocation8 + $0x170] sm:$0xff] }
  0xdc   :  { %561 = vmatpush.msrb.mxu2 %v534_v2  ;;  %812 = vmatpush.msra.mxu3 %v811_v42  ;;  %v714_v2 = vld [vmem:[#allocation8 + $0x50] sm:$0xff]  ;;  %v800_v42 = vld [vmem:[#allocation8 + $0x120] sm:$0xff] }
  0xdd   :  { %740 = vmatpush.msra.mxu1 %v733_v45  ;;  %v797_v45 = vld [vmem:[#allocation8 + $0x108] sm:$0xff] }
  0xde   :  { %562 = vmatpush.msrb.mxu2 %v533_v5  ;;  %813 = vmatpush.msra.mxu3 %v810_v46  ;;  %v729_v5 = vld [vmem:[#allocation8 + $0xc0] sm:$0xff] }
  0xdf   :  { %741 = vmatpush.msra.mxu1 %v732_v52  ;;  %v796_v46 = vld [vmem:[#allocation8 + $0x100] sm:$0xff] }
  0xe0   :  { %563 = vmatpush.msrb.mxu2 %v532_v8  ;;  %814 = vmatpush.msra.mxu3 %v809_v56 }
  0xe1   :  { %742 = vmatpush.msra.mxu1 %v731_v59 }
  0xe2   :  { %766 = vmatpush.msra.mxu2 %v719_v36  ;;  %815 = vmatpush.msra.mxu3 %v808_v62  ;;  %v706_v36 = vld [vmem:[#allocation8 + $0x10] sm:$0xff] }
  0xe3   :  { %919 = vmatmul.msk.f32.gmra.mxu1 %vm124_vm0, %v318_v44 }
  0xe4   :  { %767 = vmatpush.msra.mxu2 %v718_v38  ;;  %743 = vmatpush.msra.mxu1 %v730_v0  ;;  %v721_v38 = vld [vmem:[#allocation8 + $0x80] sm:$0xff] }
  0xe6   :  { %768 = vmatpush.msra.mxu2 %v717_v41  ;;  %744 = vmatpush.msra.mxu1 %v729_v5  ;;  %v704_v41 = vld [vmem:[#allocation8] sm:$0xff] }
  0xe8   :  { %769 = vmatpush.msra.mxu2 %v716_v53  ;;  %745 = vmatpush.msra.mxu1 %v728_v10 }
  0xea   :  { %770 = vmatpush.msra.mxu2 %v715_v60 }
  0xec   :  { %771 = vmatpush.msra.mxu2 %v714_v2 }
  0xee   :  { %772 = vmatpush.msra.mxu2 %v713_v9 }
  0xf0   :  { %773 = vmatpush.msra.mxu2 %v712_v12 }
 0x13f   :  { %v405_v17 = vpop.f32.mrf.mxu0 }
 0x143   :  { %v376_v18 = vpop.f32.mrf.mxu3 }
 0x144   :  { %v406_v19 = vadd.f32 %v405_v17, %v376_v18 }
 0x148   :  { %v451_v21 = vpop.f32.mrf.mxu1  ;;  %v408_v23 = vpop.f32.mrf.mxu0 }
 0x149   :  { %v463_v22 = vadd.f32 %v451_v21, %v406_v19  ;;  %v711_v21 = vld [vmem:[#allocation8 + $0x38] sm:$0xff] }
 0x14a   :  { %774 = vmatpush.msra.mxu2 %v711_v21 }
 0x14b   :  { %v471_v24 = vadd.f32 %v1180_v20, %v463_v22  ;;  %v379_v25 = vpop.f32.mrf.mxu3  ;;  %v807_v22 = vld [vmem:[#allocation8 + $0x158] sm:$0xff] }
 0x14c   :  { %v409_v27 = vadd.f32 %v408_v23, %v379_v25  ;;  %816 = vmatpush.msra.mxu3 %v807_v22  ;;  %v726_v23 = vld [vmem:[#allocation8 + $0xa8] sm:$0xff]  ;;  %v806_v25 = vld [vmem:[#allocation8 + $0x150] sm:$0xff] }
 0x14d   :  { %vm475_vm7 = vcmp.gt.f32.partialorder %v471_v24, 0.0  ;;  %v479_v26 = vmul.f32 0.01, %v471_v24 }
 0x14e   :  { %817 = vmatpush.msra.mxu3 %v806_v25 }
 0x14f   :  { %v483_v28 = vsel %vm475_vm7, %v471_v24, %v479_v26  ;;  %v710_v24 = vld [vmem:[#allocation8 + $0x30] sm:$0xff]  ;;  %v725_v26 = vld [vmem:[#allocation8 + $0xa0] sm:$0xff] }
 0x150   :  { %v454_v29 = vpop.f32.mrf.mxu1  ;;  %v491_v30 = vrot.slane %v483_v28, 7  ;;  %564 = vmatmul.f32.vlgmr.msrb.gmra.mxu2 %v483_v28  ;;  %v411_v37 = vpop.f32.mrf.mxu0  ;;  %v503_v47 = vrot.slane %v483_v28, 1  ;;  %v805_v28 = vld [vmem:[#allocation8 + $0x148] sm:$0xff] }
 0x151   :  { %v464_v31 = vadd.f32 %v454_v29, %v409_v27  ;;  %775 = vmatpush.msra.mxu2 %v710_v24  ;;  %v709_v27 = vld [vmem:[#allocation8 + $0x28] sm:$0xff]  ;;  %818 = vmatpush.msra.mxu3 %v805_v28  ;;  %v724_v29 = vld [vmem:[#allocation8 + $0x98] sm:$0xff] }
 0x152   :  { %921 = vmatmul.msk.f32.vlgmr.msrb.gmra.mxu3 %vm1137_vm2, %v491_v30 }
 0x153   :  { %v472_v32 = vadd.f32 %v1180_v20, %v464_v31  ;;  %v382_v33 = vpop.f32.mrf.mxu3  ;;  %776 = vmatpush.msra.mxu2 %v709_v27  ;;  %v804_v31 = vld [vmem:[#allocation8 + $0x140] sm:$0xff] }
 0x154   :  { %v412_v43 = vadd.f32 %v411_v37, %v382_v33  ;;  %819 = vmatpush.msra.mxu3 %v804_v31  ;;  %v707_v33 = vld [vmem:[#allocation8 + $0x18] sm:$0xff]  ;;  %v802_v37 = vld [vmem:[#allocation8 + $0x130] sm:$0xff] }
 0x155   :  { %vm476_vm8 = vcmp.gt.f32.partialorder %v472_v32, 0.0  ;;  %v480_v39 = vmul.f32 0.01, %v472_v32 }
 0x156   :  { %820 = vmatpush.msra.mxu3 %v803_v34 }
 0x157   :  { %v484_v44 = vsel %vm476_vm8, %v472_v32, %v480_v39  ;;  %v723_v32 = vld [vmem:[#allocation8 + $0x90] sm:$0xff]  ;;  %v705_v39 = vld [vmem:[#allocation8 + $0x8] sm:$0xff] }
 0x158   :  { %v457_v48 = vpop.f32.mrf.mxu1  ;;  %v492_v49 = vrot.slane %v484_v44, 7  ;;  %v504_v50 = vrot.slane %v484_v44, 1  ;;  %567 = vmatmul.f32.gmra.mxu2 %v484_v44  ;;  %v414_v1 = vpop.f32.mrf.mxu0  ;;  %821 = vmatpush.msra.mxu3 %v802_v37  ;;  %v798_v44 = vld [vmem:[#allocation8 + $0x110] sm:$0xff] }
 0x159   :  { %v465_v51 = vadd.f32 %v457_v48, %v412_v43  ;;  %v799_v43 = vld [vmem:[#allocation8 + $0x118] sm:$0xff] }
 0x15a   :  { %v493_v54 = vsel %vm111_vm1, %v491_v30, %v492_v49  ;;  %v505_v55 = vsel %vm124_vm0, %v503_v47, %v504_v50  ;;  %v708_v30 = vld [vmem:[#allocation8 + $0x20] sm:$0xff]  ;;  %822 = vmatpush.msra.mxu3 %v801_v40 }
 0x15b   :  { %v473_v57 = vadd.f32 %v1180_v20, %v465_v51  ;;  %596 = vmatmul.f32.gmra.mxu3 %v493_v54  ;;  %639 = vmatmul.f32.vlgmr.msra.gmra.mxu0 %v505_v55  ;;  %v385_v61 = vpop.f32.mrf.mxu3 }
 0x15c   :  { %v415_v3 = vadd.f32 %v414_v1, %v385_v61  ;;  %777 = vmatpush.msra.mxu2 %v708_v30  ;;  %823 = vmatpush.msra.mxu3 %v800_v42 }
 0x15d   :  { %vm477_vm9 = vcmp.gt.f32.partialorder %v473_v57, 0.0  ;;  %v481_v63 = vmul.f32 0.01, %v473_v57 }
 0x15e   :  { %778 = vmatpush.msra.mxu2 %v707_v33  ;;  %824 = vmatpush.msra.mxu3 %v799_v43 }
 0x15f   :  { %v485_v4 = vsel %vm477_vm9, %v473_v57, %v481_v63 }
 0x160   :  { %v460_v6 = vpop.f32.mrf.mxu1  ;;  %570 = vmatmul.f32.gmra.mxu2 %v485_v4  ;;  %v494_v7 = vrot.slane %v485_v4, 7  ;;  %v506_v15 = vrot.slane %v485_v4, 1  ;;  %825 = vmatpush.msra.mxu3 %v798_v44 }
 0x161   :  { %v466_v8 = vadd.f32 %v460_v6, %v415_v3  ;;  %779 = vmatpush.msra.mxu2 %v706_v36 }
 0x162   :  { %826 = vmatpush.msra.mxu3 %v797_v45 }
 0x163   :  { %v474_v11 = vadd.f32 %v1180_v20, %v466_v8  ;;  %923 = vmatmul.msk.f32.gmra.mxu3 %vm1137_vm2, %v494_v7  ;;  %924 = vmatmul.msk.f32.gmra.mxu0 %vm124_vm0, %v504_v50  ;;  %v727_v20 = vld [vmem:[#allocation8 + $0xb0] sm:$0xff]  ;;  %v940_v50 = vld [vmem:[%s1227_s6] ss:$0 sm:$0xff] }
 0x164   :  { %746 = vmatpush.msra.mxu1 %v727_v20  ;;  %780 = vmatpush.msra.mxu2 %v705_v39 }
 0x165   :  { %vm478_vm10 = vcmp.gt.f32.partialorder %v474_v11, 0.0  ;;  %v482_v13 = vmul.f32 0.01, %v474_v11  ;;  %827 = vmatpush.msra.mxu3 %v796_v46 }
 0x166   :  { %747 = vmatpush.msra.mxu1 %v726_v23  ;;  %781 = vmatpush.msra.mxu2 %v704_v41 }
 0x167   :  { %v486_v14 = vsel %vm478_vm10, %v474_v11, %v482_v13 }
 0x168   :  { %v495_v16 = vrot.slane %v486_v14, 7  ;;  %v507_v17 = vrot.slane %v486_v14, 1  ;;  %573 = vmatmul.f32.gmra.mxu2 %v486_v14  ;;  %748 = vmatpush.msra.mxu1 %v725_v26 }
 0x16a   :  { %v496_v18 = vsel %vm111_vm1, %v494_v7, %v495_v16  ;;  %v508_v19 = vsel %vm124_vm0, %v506_v15, %v507_v17  ;;  %749 = vmatpush.msra.mxu1 %v724_v29 }
 0x16b   :  { %602 = vmatmul.f32.gmra.mxu3 %v496_v18  ;;  %645 = vmatmul.f32.gmra.mxu0 %v508_v19 }
 0x16c   :  { %750 = vmatpush.msra.mxu1 %v723_v32 }
 0x16e   :  { %751 = vmatpush.msra.mxu1 %v722_v35  ;;  %v941_v35 = vld [vmem:[%s1229_s8] ss:$0 sm:$0xff] }
 0x170   :  { %752 = vmatpush.msra.mxu1 %v721_v38 }
 0x173   :  { %925 = vmatmul.msk.f32.gmra.mxu0 %vm124_vm0, %v507_v17 }
 0x1d3   :  { %v565_v47 = vpop.f32.mrf.mxu2 }
 0x1d5   :  { %v594_v48 = vpop.f32.mrf.mxu3 }
 0x1d6   :  { %v595_v49 = vadd.f32 %v594_v48, %v565_v47  ;;  %v866_v47 = vld [vmem:[%s1230_s9 + $0x8] sm:$0xff] }
 0x1d8   :  { %v640_v51 = vpop.f32.mrf.mxu0 }
 0x1d9   :  { %v652_v52 = vadd.f32 %v640_v51, %v595_v49 }
 0x1db   :  { %v660_v53 = vadd.f32 %v940_v50, %v652_v52  ;;  %v568_v54 = vpop.f32.mrf.mxu2 }
 0x1dd   :  { %v668_v55 = vmul.f32 0.01, %v660_v53  ;;  %vm664_vm11 = vcmp.gt.f32.partialorder %v660_v53, 0.0 }
 0x1de   :  { %v597_v56 = vpop.f32.mrf.mxu3 }
 0x1df   :  { %v598_v57 = vadd.f32 %v597_v56, %v568_v54  ;;  %v672_v59 = vsel %vm664_vm11, %v660_v53, %v668_v55 }
 0x1e0   :  { %v643_v60 = vpop.f32.mrf.mxu0  ;;  %v680_v61 = vrot.slane %v672_v59, 7  ;;  %753 = vmatmul.f32.vlgmr.msra.gmra.mxu1 %v672_v59  ;;  %v692_v5 = vrot.slane %v672_v59, 1 }
 0x1e1   :  { %v653_v62 = vadd.f32 %v643_v60, %v598_v57 }
 0x1e2   :  { %927 = vmatmul.msk.f32.vlgmr.msra.gmra.mxu2 %vm1137_vm2, %v680_v61 }
 0x1e3   :  { %v661_v63 = vadd.f32 %v940_v50, %v653_v62  ;;  %v571_v0 = vpop.f32.mrf.mxu2 }
 0x1e5   :  { %vm665_vm12 = vcmp.gt.f32.partialorder %v661_v63, 0.0  ;;  %v669_v1 = vmul.f32 0.01, %v661_v63 }
 0x1e6   :  { %v600_v2 = vpop.f32.mrf.mxu3 }
 0x1e7   :  { %v601_v3 = vadd.f32 %v600_v2, %v571_v0  ;;  %v673_v4 = vsel %vm665_vm12, %v661_v63, %v669_v1 }
 0x1e8   :  { %v646_v6 = vpop.f32.mrf.mxu0  ;;  %v681_v7 = vrot.slane %v673_v4, 7  ;;  %v693_v8 = vrot.slane %v673_v4, 1  ;;  %756 = vmatmul.f32.gmra.mxu1 %v673_v4 }
 0x1e9   :  { %v654_v9 = vadd.f32 %v646_v6, %v601_v3 }
 0x1ea   :  { %v682_v10 = vsel %vm111_vm1, %v680_v61, %v681_v7  ;;  %v694_v11 = vsel %vm124_vm0, %v692_v5, %v693_v8 }
 0x1eb   :  { %v662_v12 = vadd.f32 %v940_v50, %v654_v9  ;;  %785 = vmatmul.f32.gmra.mxu2 %v682_v10  ;;  %828 = vmatmul.f32.vlgmr.msra.gmra.mxu3 %v694_v11  ;;  %v574_v14 = vpop.f32.mrf.mxu2 }
 0x1ed   :  { %vm666_vm13 = vcmp.gt.f32.partialorder %v662_v12, 0.0  ;;  %v670_v13 = vmul.f32 0.01, %v662_v12 }
 0x1ee   :  { %v603_v15 = vpop.f32.mrf.mxu3 }
 0x1ef   :  { %v604_v16 = vadd.f32 %v603_v15, %v574_v14  ;;  %v674_v17 = vsel %vm666_vm13, %v662_v12, %v670_v13 }
 0x1f0   :  { %v649_v18 = vpop.f32.mrf.mxu0  ;;  %759 = vmatmul.f32.gmra.mxu1 %v674_v17  ;;  %v683_v19 = vrot.slane %v674_v17, 7  ;;  %v695_v24 = vrot.slane %v674_v17, 1 }
 0x1f1   :  { %v655_v20 = vadd.f32 %v649_v18, %v604_v16 }
 0x1f3   :  { %v663_v21 = vadd.f32 %v940_v50, %v655_v20  ;;  %929 = vmatmul.msk.f32.gmra.mxu2 %vm1137_vm2, %v683_v19  ;;  %930 = vmatmul.msk.f32.gmra.mxu3 %vm124_vm0, %v693_v8  ;;  %v865_v50 = vld [vmem:[%s1230_s9] sm:$0xff] }
 0x1f4   :  { %v942_v20 = vld [vmem:[#allocation2] ss:$0 sm:$0xff] }
 0x1f5   :  { %vm667_vm14 = vcmp.gt.f32.partialorder %v663_v21, 0.0  ;;  %v671_v22 = vmul.f32 0.01, %v663_v21 }
 0x1f7   :  { %v675_v23 = vsel %vm667_vm14, %v663_v21, %v671_v22 }
 0x1f8   :  { %v684_v25 = vrot.slane %v675_v23, 7  ;;  %v696_v26 = vrot.slane %v675_v23, 1  ;;  %762 = vmatmul.f32.gmra.mxu1 %v675_v23 }
 0x1fa   :  { %v685_v27 = vsel %vm111_vm1, %v683_v19, %v684_v25  ;;  %v697_v28 = vsel %vm124_vm0, %v695_v24, %v696_v26 }
 0x1fb   :  { %791 = vmatmul.f32.gmra.mxu2 %v685_v27  ;;  %834 = vmatmul.f32.gmra.mxu3 %v697_v28 }
 0x203   :  { %931 = vmatmul.msk.f32.gmra.mxu3 %vm124_vm0, %v696_v26 }
 0x25d   :  { %v754_v58 = vpop.f32.mrf.mxu1 }
 0x265   :  { %v783_v29 = vpop.f32.mrf.mxu2  ;;  %v757_v32 = vpop.f32.mrf.mxu1 }
 0x266   :  { %v784_v33 = vadd.f32 %v783_v29, %v754_v58 }
 0x26d   :  { %v760_v42 = vpop.f32.mrf.mxu1 }
 0x26e   :  { %v786_v30 = vpop.f32.mrf.mxu2  ;;  %v829_v31 = vpop.f32.mrf.mxu3 }
 0x26f   :  { %v841_v34 = vadd.f32 %v829_v31, %v784_v33  ;;  %v787_v36 = vadd.f32 %v786_v30, %v757_v32 }
 0x271   :  { %v849_v38 = vadd.f32 %v941_v35, %v841_v34 }
 0x273   :  { %v857_v43 = vmul.f32 0.01, %v849_v38  ;;  %vm853_vm0 = vcmp.gt.f32.partialorder %v849_v38, 0.0 }
 0x275   :  { %v861_v49 = vsel %vm853_vm0, %v849_v38, %v857_v43  ;;  %v763_v56 = vpop.f32.mrf.mxu1 }
 0x276   :  { %v832_v37 = vpop.f32.mrf.mxu3  ;;  %v789_v40 = vpop.f32.mrf.mxu2  ;;  %v867_v53 = vmul.f32 %v865_v50, %v861_v49 }
 0x277   :  { %v842_v39 = vadd.f32 %v832_v37, %v787_v36  ;;  %v790_v45 = vadd.f32 %v789_v40, %v760_v42 }
 0x279   :  { %v850_v41 = vadd.f32 %v941_v35, %v842_v39 }
 0x27b   :  { %vm854_vm15 = vcmp.gt.f32.partialorder %v850_v41, 0.0  ;;  %v858_v44 = vmul.f32 0.01, %v850_v41 }
 0x27d   :  { %v862_v46 = vsel %vm854_vm15, %v850_v41, %v858_v44 }
 0x27e   :  { %v835_v48 = vpop.f32.mrf.mxu3  ;;  %v868_v52 = vmul.f32 %v866_v47, %v862_v46  ;;  %v792_v54 = vpop.f32.mrf.mxu2 }
 0x27f   :  { %v843_v51 = vadd.f32 %v835_v48, %v790_v45  ;;  %v793_v59 = vadd.f32 %v792_v54, %v763_v56 }
 0x280   :  { %v871_v57 = vadd.f32 %v868_v52, %v867_v53 }
 0x281   :  { %v851_v55 = vadd.f32 %v941_v35, %v843_v51 }
 0x282   :  { %v872_v63 = vrot.slane %v871_v57, 4 }
 0x283   :  { %v859_v61 = vmul.f32 0.01, %v851_v55  ;;  %vm855_vm1 = vcmp.gt.f32.partialorder %v851_v55, 0.0 }
 0x284   :  { %v873_v3 = vadd.f32 %v872_v63, %v871_v57 }
 0x285   :  { %v863_v1 = vsel %vm855_vm1, %v851_v55, %v859_v61 }
 0x286   :  { %v838_v60 = vpop.f32.mrf.mxu3  ;;  %v869_v5 = vmul.f32 %v865_v50, %v863_v1  ;;  %v874_v8 = vrot.slane %v873_v3, 2 }
 0x287   :  { %v844_v62 = vadd.f32 %v838_v60, %v793_v59 }
 0x288   :  { %v875_v10 = vadd.f32 %v874_v8, %v873_v3 }
 0x289   :  { %v852_v0 = vadd.f32 %v941_v35, %v844_v62 }
 0x28a   :  { %v876_v13 = vrot.slane %v875_v10, 1 }
 0x28b   :  { %vm856_vm2 = vcmp.gt.f32.partialorder %v852_v0, 0.0  ;;  %v860_v2 = vmul.f32 0.01, %v852_v0 }
 0x28c   :  { %v877_v16 = vadd.f32 %v876_v13, %v875_v10 }
 0x28d   :  { %v864_v4 = vsel %vm856_vm2, %v852_v0, %v860_v2 }
 0x28e   :  { %v870_v6 = vmul.f32 %v866_v47, %v864_v4 }
 0x290   :  { %v878_v7 = vadd.f32 %v870_v6, %v869_v5 }
 0x292   :  { %v879_v9 = vrot.slane %v878_v7, 4 }
 0x294   :  { %v880_v11 = vadd.f32 %v879_v9, %v878_v7 }
 0x296   :  { %v881_v12 = vrot.slane %v880_v11, 2 }
 0x298   :  { %v882_v14 = vadd.f32 %v881_v12, %v880_v11 }
 0x29a   :  { %v883_v15 = vrot.slane %v882_v14, 1 }
 0x29c   :  { %v884_v17 = vadd.f32 %v883_v15, %v882_v14 }
 0x29e   :  { %v888_v18 = vsel %vm887_vm3, %v884_v17, %v877_v16 }
 0x29f   :  { %v891_v19 = vsel %vm890_vm4, %v888_v18, 0.0 }
 0x2a0   :  { %892 = vadd.xlane.f32.xlu0 %v891_v19 }
 0x313   :  { %v893_v21 = vpop.xlane.xlu0 %892 }
 0x314   :  { %v898_v22 = vadd.f32 %v942_v20, %v893_v21 }
 0x316   :  { %900 = vst.msk [vmem:[%s1232_s11] sm:$0x3] %vm899_vm5, %v898_v22 }
 0x317   :  { %905 = vsyncpa [#allocation4], 1 }
 0x318   :  { %906 = vsyncpa [#allocation6], 1 }
 0x319   :  { %907 = vsyncpa [#allocation9], 1 }

</bundles_post_ra>
